<compile_context>
chip_gen: v7x
topology: tpu7x:2x2x1
jax: 0.10.0
libtpu: 0.0.40
codegen_flags: <defaults>
</compile_context>

<pallas_src>
import jax
import jax.numpy as jnp
from jax import lax
from jax.experimental import pallas as pl
from jax.experimental.pallas import tpu as pltpu

N_OBS = 5
X_DIM = 2
HIDDEN_F1 = 20
HIDDEN_F2 = 20
DIM_OUT = 5

# ----------------------------------------------------------------------------
# Packed-weight slab layout: name -> (row_start, n_rows, n_cols).
# Every band starts at an 8-aligned row and column 0 (trivially aligned loads).
# ----------------------------------------------------------------------------
_SLAB_LAYOUT = {
    "w2a": (0,   N_OBS * HIDDEN_F2, X_DIM * N_OBS),   # (100, 10) block-diag kron(I5, W2a)
    "b2a": (104, N_OBS * HIDDEN_F2, 1),               # (100, 1)  b2a tiled over obs
    "w2b": (208, DIM_OUT,           N_OBS * HIDDEN_F2),  # (5, 100) [W2b]*5 (obs-sum folded)
    "b2b": (216, DIM_OUT,           1),               # (5, 1)    5 * b2b
    "w1a": (224, HIDDEN_F1,         DIM_OUT),         # (20, 5)
    "b1a": (248, HIDDEN_F1,         1),               # (20, 1)
    "w1b": (272, DIM_OUT,           HIDDEN_F1),       # (5, 20)
    "b1b": (280, DIM_OUT,           1),               # (5, 1)
}
SLAB_SHAPE = (288, 128)

# Contract the last dim of both operands: A @ B.T (attention-style NT dims).
_NT_DIMS = (((1,), (1,)), ((), ()))

TB_MAX = 8192  # lane-dense batch tile upper bound


def _slab_get(w_ref, name):
    r0, nr, nc = _SLAB_LAYOUT[name]
    return w_ref[r0:r0 + nr, 0:nc]


def summary_net_kernel(x_ref, w_ref, o_ref):
    # x_ref : (tb, n_obs*x_dim)  natural row block of x (batch on sublanes)
    # w_ref : (288, 128)         packed fused weights / biases
    # o_ref : (dim_out, tb)      lane-dense output block (batch on lanes)
    x = x_ref[...]                                        # (tb, 10)

    w2a = _slab_get(w_ref, "w2a"); b2a = _slab_get(w_ref, "b2a")
    w2b = _slab_get(w_ref, "w2b"); b2b = _slab_get(w_ref, "b2b")
    w1a = _slab_get(w_ref, "w1a"); b1a = _slab_get(w_ref, "b1a")
    w1b = _slab_get(w_ref, "w1b"); b1b = _slab_get(w_ref, "b1b")

    # f2 layer 1 for all 5 observations at once (block-diagonal weights), as a
    # single MXU A·Bᵀ matmul — no explicit transpose of the big x block.
    h = jnp.maximum(
        lax.dot_general(w2a, x, _NT_DIMS, preferred_element_type=jnp.float32)
        + b2a, 0.0)                                       # (100, tb)

    # f2 layer 2 with the sum-over-observations folded into tiled weights and
    # the per-observation bias folded as 5*b2b (tolerance-level equivalent).
    p = jnp.dot(w2b, h, preferred_element_type=jnp.float32) + b2b      # (5, tb)

    # f1: Linear(5,20) -> ReLU -> Linear(20,5)
    h1 = jnp.maximum(
        jnp.dot(w1a, p, preferred_element_type=jnp.float32) + b1a, 0.0)  # (20, tb)
    o_ref[...] = jnp.dot(w1b, h1, preferred_element_type=jnp.float32) + b1b  # (5, tb)


def pack_params(params):
    """Fuse the per-observation f2 weights and pack all 8 operands into one
    (288, 128) f32 slab (single DMA, single padded VMEM block)."""
    w2a, b2a, w2b, b2b, w1a, b1a, w1b, b1b = (p.astype(jnp.float32) for p in params)
    eye = jnp.eye(N_OBS, dtype=jnp.float32)
    fused = {
        "w2a": jnp.kron(eye, w2a),                          # (100, 10) block-diag
        "b2a": jnp.tile(b2a, N_OBS).reshape(-1, 1),         # (100, 1)
        "w2b": jnp.tile(w2b, (1, N_OBS)),                   # (5, 100) obs-sum folded
        "b2b": (float(N_OBS) * b2b).reshape(-1, 1),         # (5, 1)
        "w1a": w1a,
        "b1a": b1a.reshape(-1, 1),
        "w1b": w1b,
        "b1b": b1b.reshape(-1, 1),
    }
    slab = jnp.zeros(SLAB_SHAPE, jnp.float32)
    for name, (r0, nr, nc) in _SLAB_LAYOUT.items():
        slab = slab.at[r0:r0 + nr, 0:nc].set(fused[name])
    return slab


def _round_up(v, m):
    return (v + m - 1) // m * m


def _pick_tb(n):
    # As large as possible (per-grid-step overhead ~0.35us dominates small
    # tiles), capped at TB_MAX, always a multiple of 128 lanes.  No ">=2 grid
    # steps" shrinking: on single-TC chips it only adds step overhead, and
    # real workloads have N >> TB_MAX anyway.
    return max(128, min(TB_MAX, _round_up(n, 128)))


def summary_net_pallas(x, params, *, tb=None, lane_major=False):
    """SummaryNet forward.

    x: (N, n_obs*x_dim) float.  Returns (N, dim_out) by default (PyTorch
    layout; costs one extra pass over the small output), or the kernel-native
    lane-dense (dim_out, N) when lane_major=True (preferred when the consumer
    can fuse / accept the transposed layout).
    """
    n, feat = x.shape
    assert feat == N_OBS * X_DIM
    x = x.astype(jnp.float32)

    if tb is None:
        tb = _pick_tb(n)
    assert tb % 128 == 0, "batch tile must be a multiple of 128 lanes"
    grid = pl.cdiv(n, tb)      # ragged tail handled by Pallas edge-block clipping

    slab = pack_params(params)

    out = pl.pallas_call(
        summary_net_kernel,
        out_shape=jax.ShapeDtypeStruct((DIM_OUT, n), jnp.float32),
        grid_spec=pltpu.PrefetchScalarGridSpec(
            num_scalar_prefetch=0,
            grid=(grid,),
            in_specs=[
                # Natural row blocks of x straight from HBM (no wrapper relayout).
                pl.BlockSpec((tb, N_OBS * X_DIM), lambda b: (b, 0)),
                # Packed weights: constant block index, fetched once.
                pl.BlockSpec(SLAB_SHAPE, lambda b: (0, 0)),
            ],
            out_specs=pl.BlockSpec((DIM_OUT, tb), lambda b: (0, b)),
        ),
        compiler_params=pltpu.CompilerParams(
            dimension_semantics=("parallel",),
            vmem_limit_bytes=48 * 1024 * 1024,
        ),
    )(x, slab)

    if lane_major:
        return out             # (dim_out, N) — no extra output pass
    return out.T               # (N, dim_out) — PyTorch layout


def init_params(key):
    """Deterministic init matching nn.Linear default U(-1/sqrt(fan_in), ...).
    Weights stored in torch layout (out_features, in_features), biases (out,)."""
    def linear(k, fan_in, fan_out):
        kw, kb = jax.random.split(k)
        bound = 1.0 / jnp.sqrt(fan_in)
        w = jax.random.uniform(kw, (fan_out, fan_in), jnp.float32, -bound, bound)
        b = jax.random.uniform(kb, (fan_out,), jnp.float32, -bound, bound)
        return w, b

    k2a, k2b, k1a, k1b = jax.random.split(key, 4)
    w2a, b2a = linear(k2a, X_DIM, HIDDEN_F2)     # f2: Linear(2, 20)
    w2b, b2b = linear(k2b, HIDDEN_F2, DIM_OUT)   # f2: Linear(20, 5)
    w1a, b1a = linear(k1a, DIM_OUT, HIDDEN_F1)   # f1: Linear(5, 20)
    w1b, b1b = linear(k1b, HIDDEN_F1, DIM_OUT)   # f1: Linear(20, 5)
    return (w2a, b2a, w2b, b2b, w1a, b1a, w1b, b1b)


def summary_net_ref(x, params):
    """Pure-JAX reference with identical semantics (for correctness check)."""
    (w2a, b2a, w2b, b2b, w1a, b1a, w1b, b1b) = params
    n = x.shape[0]
    x3 = x.reshape(n, N_OBS, X_DIM)
    h = jnp.maximum(jnp.einsum("nod,hd->noh", x3, w2a) + b2a, 0.0)
    f2 = jnp.einsum("noh,kh->nok", h, w2b) + b2b
    f1_in = jnp.sum(f2, axis=1)
    h1 = jnp.maximum(f1_in @ w1a.T + b1a, 0.0)
    return h1 @ w1b.T + b1b


if __name__ == "__main__":
    key = jax.random.PRNGKey(0)
    kx, kp = jax.random.split(key)

    N = 512                                                    # small demo batch
    x = jax.random.normal(kx, (N, N_OBS * X_DIM), jnp.float32)  # (512, 10)
    params = init_params(kp)

    ref = summary_net_ref(x, params)

    # Multi-step grid path (tb=256 -> 2 lane-dense grid steps), PyTorch layout.
    out = jax.block_until_ready(summary_net_pallas(x, params, tb=256))
    assert out.shape == (N, DIM_OUT)
    assert jnp.allclose(out, ref, atol=2e-5, rtol=2e-5), \
        "mismatch vs JAX reference (tb=256)"

    # Default tile pick + lane-major (no trailing output transpose) path.
    out_lm = jax.block_until_ready(summary_net_pallas(x, params, lane_major=True))
    assert out_lm.shape == (DIM_OUT, N)
    assert jnp.allclose(out_lm.T, ref, atol=2e-5, rtol=2e-5), \
        "mismatch vs JAX reference (default tb, lane-major)"

    print("KERNEL_OK")
</pallas_src>

<mosaic_0001>
module attributes {stable_mosaic.version = 11 : i64} {
  func.func @summary_net_kernel(%arg0: i32, %arg1: memref<256x10xf32, #tpu.memory_space<vmem>>, %arg2: memref<288x128xf32, #tpu.memory_space<vmem>>, %arg3: memref<5x256xf32, #tpu.memory_space<vmem>>) attributes {dimension_semantics = [#tpu.dimension_semantics<parallel>], iteration_bounds = array<i64: 2>, scalar_prefetch = 0 : i64, scratch_operands = 0 : i64, tpu.core_type = #tpu.core_type<tc>, window_params = [{transform_indices = @transform_0, window_bounds = array<i64: 256, 10>}, {pipeline_mode = #tpu.pipeline_mode<synchronous>, transform_indices = @transform_1, window_bounds = array<i64: 288, 128>}, {transform_indices = @transform_2, window_bounds = array<i64: 5, 256>}]} {
    %c0 = arith.constant 0 : index
    %c0_0 = arith.constant 0 : index
    %0 = vector.load %arg1[%c0, %c0_0] : memref<256x10xf32, #tpu.memory_space<vmem>>, vector<256x10xf32>
    %c0_1 = arith.constant 0 : index
    %c0_2 = arith.constant 0 : index
    %1 = vector.load %arg2[%c0_1, %c0_2] : memref<288x128xf32, #tpu.memory_space<vmem>>, vector<100x10xf32>
    %c104 = arith.constant 104 : index
    %c0_3 = arith.constant 0 : index
    %2 = vector.load %arg2[%c104, %c0_3] : memref<288x128xf32, #tpu.memory_space<vmem>>, vector<100x1xf32>
    %c208 = arith.constant 208 : index
    %c0_4 = arith.constant 0 : index
    %3 = vector.load %arg2[%c208, %c0_4] : memref<288x128xf32, #tpu.memory_space<vmem>>, vector<5x100xf32>
    %c216 = arith.constant 216 : index
    %c0_5 = arith.constant 0 : index
    %4 = vector.load %arg2[%c216, %c0_5] : memref<288x128xf32, #tpu.memory_space<vmem>>, vector<5x1xf32>
    %c224 = arith.constant 224 : index
    %c0_6 = arith.constant 0 : index
    %5 = vector.load %arg2[%c224, %c0_6] : memref<288x128xf32, #tpu.memory_space<vmem>>, vector<20x5xf32>
    %c248 = arith.constant 248 : index
    %c0_7 = arith.constant 0 : index
    %6 = vector.load %arg2[%c248, %c0_7] : memref<288x128xf32, #tpu.memory_space<vmem>>, vector<20x1xf32>
    %c272 = arith.constant 272 : index
    %c0_8 = arith.constant 0 : index
    %7 = vector.load %arg2[%c272, %c0_8] : memref<288x128xf32, #tpu.memory_space<vmem>>, vector<5x20xf32>
    %c280 = arith.constant 280 : index
    %c0_9 = arith.constant 0 : index
    %8 = vector.load %arg2[%c280, %c0_9] : memref<288x128xf32, #tpu.memory_space<vmem>>, vector<5x1xf32>
    %cst = arith.constant dense<0.000000e+00> : vector<100x256xf32>
    %9 = tpu.matmul %1, %0, %cst {dimension_numbers = #tpu.dot_dimension_numbers<[1], [1], [0], [0], [0, 0, 1, 0], [], []>} : vector<100x10xf32>, vector<256x10xf32>, vector<100x256xf32> -> vector<100x256xf32>
    %10 = vector.broadcast %2 : vector<100x1xf32> to vector<100x256xf32>
    %11 = arith.addf %9, %10 : vector<100x256xf32>
    %cst_10 = arith.constant 0.000000e+00 : f32
    %12 = vector.broadcast %cst_10 : f32 to vector<100x256xf32>
    %13 = arith.maximumf %11, %12 : vector<100x256xf32>
    %cst_11 = arith.constant dense<0.000000e+00> : vector<5x256xf32>
    %14 = tpu.matmul %3, %13, %cst_11 {dimension_numbers = #tpu.dot_dimension_numbers<[1], [0], [0], [1], [0, 0, 1, 1], [], []>} : vector<5x100xf32>, vector<100x256xf32>, vector<5x256xf32> -> vector<5x256xf32>
    %15 = vector.broadcast %4 : vector<5x1xf32> to vector<5x256xf32>
    %16 = arith.addf %14, %15 : vector<5x256xf32>
    %cst_12 = arith.constant dense<0.000000e+00> : vector<20x256xf32>
    %17 = tpu.matmul %5, %16, %cst_12 {dimension_numbers = #tpu.dot_dimension_numbers<[1], [0], [0], [1], [0, 0, 1, 1], [], []>} : vector<20x5xf32>, vector<5x256xf32>, vector<20x256xf32> -> vector<20x256xf32>
    %18 = vector.broadcast %6 : vector<20x1xf32> to vector<20x256xf32>
    %19 = arith.addf %17, %18 : vector<20x256xf32>
    %cst_13 = arith.constant 0.000000e+00 : f32
    %20 = vector.broadcast %cst_13 : f32 to vector<20x256xf32>
    %21 = arith.maximumf %19, %20 : vector<20x256xf32>
    %cst_14 = arith.constant dense<0.000000e+00> : vector<5x256xf32>
    %22 = tpu.matmul %7, %21, %cst_14 {dimension_numbers = #tpu.dot_dimension_numbers<[1], [0], [0], [1], [0, 0, 1, 1], [], []>} : vector<5x20xf32>, vector<20x256xf32>, vector<5x256xf32> -> vector<5x256xf32>
    %23 = vector.broadcast %8 : vector<5x1xf32> to vector<5x256xf32>
    %24 = arith.addf %22, %23 : vector<5x256xf32>
    %c0_15 = arith.constant 0 : index
    %c0_16 = arith.constant 0 : index
    %25 = vector.load %arg3[%c0_15, %c0_16] : memref<5x256xf32, #tpu.memory_space<vmem>>, vector<5x256xf32>
    tpu.vector_store %arg3[%c0_15, %c0_16], %24 {strides = array<i32>} : memref<5x256xf32, #tpu.memory_space<vmem>>, vector<5x256xf32>,
    return
  }
  func.func @transform_0(%arg0: i32) -> (i32, i32) {
    %c0_i32 = arith.constant 0 : i32
    %c0_i32_0 = arith.constant 0 : i32
    return %arg0, %c0_i32 : i32, i32
  }
  func.func @transform_1(%arg0: i32) -> (i32, i32) {
    %c0_i32 = arith.constant 0 : i32
    %c0_i32_0 = arith.constant 0 : i32
    %c0_i32_1 = arith.constant 0 : i32
    return %c0_i32, %c0_i32_0 : i32, i32
  }
  func.func @transform_2(%arg0: i32) -> (i32, i32) {
    %c0_i32 = arith.constant 0 : i32
    %c0_i32_0 = arith.constant 0 : i32
    return %c0_i32, %arg0 : i32, i32
  }
}

</mosaic_0001>

<bundles_post_ra>
// kernel: tpu_custom_call.1
= control target key start
LH: loop header
LB: loop body
LE: loop exit
PB: predicated region body
PF: predicated region fallthrough
CT: control target
= control target key end

     0   :  { %7 = vsyncpa [#allocation3], 0  ;;  %s1599_s0 = inlined_call_operand.vmem [shape: f32[512,10], index: 0, kind: input, shape index: {}]   ;;  %s1600_s1 = inlined_call_operand.vmem [shape: f32[288,128], index: 1, kind: input, shape index: {}]   ;;  %s1601_s2 = inlined_call_operand.hbm [shape: f32[5,512], index: 2, kind: output, shape index: {}]  }
   0x1   :  { %9 = vsyncpa [#allocation3 + $0x1], 0  ;;  %s1281_s9 = smov 0   ;;  %s1283_s10 = smov 0  }
   0x2   :  { %s1285_s11 = smov 0   ;;  %s1287_s12 = smov 0  }
   0x3 LB: > { %s1302_s13 = sadd.s32 4294967295, %s1261_s12   ;;  %s953_s14 = sadd.s32 4294967294, %s1261_s12   ;;  %s1261_s12 = sphi %s1287_s12, %s1609_s12   ;;  %s1257_s11 = sphi %s1285_s11, %s1608_s11   ;;  %s1253_s10 = sphi %s1283_s10, %s1607_s10   ;;  %s1249_s9 = sphi %s1281_s9, %s1606_s9  }
   0x4   : > { %s1306_s15 = sadd.s32 1, %s1261_s12   ;;  %s69_s16 = sadd.s32 1, %s1257_s11 }
   0x5   : > { %s66_s17 = ssub.s32 %s1261_s12, %s1306_s15  ;;  %p79_p0 = scmp.ne.s32.totalorder %s1257_s11, %s1253_s10 }
   0x6   : > { %p67_p1 = scmp.eq.s32.totalorder %s66_s17, 0  ;;  %p80_p2 = scmp.eq.s32.totalorder %s1302_s13, 1 }
   0x7   : > { %p85_p3 = scmp.ne.s32.totalorder %s1253_s10, %s1249_s9  ;;  %p86_p4 = scmp.eq.s32.totalorder %s953_s14, 1 }
   0x8   : > { %s1317_s18 = scalar_select %p67_p1, %s1257_s11, %s69_s16  }
   0x9   : > { %p1319_p5 = por %p80_p2, %p79_p0  ;;  %p1323_p6 = por %p86_p4, %p85_p3 }
   0xa   : > { %p956_p7 = scmp.ge.s32.totalorder %s1261_s12, 1  ;;  %p116_p8 = scmp.lt.s32.totalorder %s1261_s12, 3 }
   0xc   : > { %p117_p9 = pnand %p956_p7, %p116_p8 }
   0xd   : > { %s958_s21 = sshll.u32 (!%p117_p9), %s1302_s13, 5  ;;  %vm278_vm0 = vcmask (!%p117_p9), 80896   ;;  %v1333_v0 = vld [vmem:[%s1600_s1] sm:$0xff] (!%p117_p9)  ;;  %v1263_v1 = vmov (!%p117_p9), 0   ;;  %v190_v2 = vld [vmem:[%s1600_s1 + $0x68] sm:$0xff] (!%p117_p9)  ;;  %v192_v3 = vld [vmem:[%s1600_s1 + $0x78] sm:$0xff] (!%p117_p9) }
   0xe   : > { %120 = sbr.rel (%p117_p9) target bundleno = 1035 (0x40b), region = 28  ;;  %p139_p10 = scmp.lt.s32.totalorder (!%p117_p9), %s958_s21, 63  ;;  %1054 = vmatprep.mubr.msk.f32.mxu0 (!%p117_p9), %vm278_vm0, %v1333_v0  ;;  %1197 = vset.pattern.permute.xlu0 (!%p117_p9), %v1263_v1  ;;  %vm1350_vm1 = vmpackc.low (!%p117_p9), %vm278_vm0, %vm278_vm0  ;;  %v191_v5 = vld [vmem:[%s1600_s1 + $0x70] sm:$0xff] (!%p117_p9)  ;;  %v193_v6 = vld [vmem:[%s1600_s1 + $0x80] sm:$0xff] (!%p117_p9)  ;;  %vm592_vm2 = vcmask (!%p117_p9), 1043456   ;;  %vm588_vm3 = vcmask (!%p117_p9), 818176  }
   0xf   : > { %1198 = vset.pattern.permute.xlu1 (!%p117_p9), %v1263_v1  ;;  %215 = vperm.xlu0 (!%p117_p9), %1197, %v190_v2   ;;  %v194_v16 = vld [vmem:[%s1600_s1 + $0x88] sm:$0xff] (!%p117_p9)  ;;  %v195_v17 = vld [vmem:[%s1600_s1 + $0x90] sm:$0xff] (!%p117_p9)  ;;  %v196_v22 = vld [vmem:[%s1600_s1 + $0x98] sm:$0xff] (!%p117_p9)  ;;  %vm695_vm4 = vcmask (!%p117_p9), 1044480   ;;  %vm685_vm5 = vcmask (!%p117_p9), 39936   ;;  %vm796_vm6 = vcmask (!%p117_p9), 162816  }
  0x10   : > { %225 = vperm.xlu1 (!%p117_p9), %1198, %v192_v3   ;;  %v197_v25 = vld [vmem:[%s1600_s1 + $0xa0] sm:$0xff] (!%p117_p9)  ;;  %v198_v26 = vld [vmem:[%s1600_s1 + $0xa8] sm:$0xff] (!%p117_p9)  ;;  %v199_v27 = vld [vmem:[%s1600_s1 + $0xb0] sm:$0xff] (!%p117_p9)  ;;  %s135_s23 = sand.u32 (!%p117_p9), 1, %s1253_s10   ;;  %s1021_s25 = sshll.u32 (!%p117_p9), %s1302_s13, 8 }
  0x11   : > { %v200_v32 = vld [vmem:[%s1600_s1 + $0xb8] sm:$0xff] (!%p117_p9)  ;;  %v201_v34 = vld [vmem:[%s1600_s1 + $0xc0] sm:$0xff] (!%p117_p9)  ;;  %v202_v36 = vld [vmem:[%s1600_s1 + $0xc8] sm:$0xf] (!%p117_p9)  ;;  %s957_s24 = sshll.u32 (!%p117_p9), %s135_s23, 4  ;;  %s1557_s30 = scalar_lea.hbm (!%p117_p9), %s1601_s2, %s1021_s25 }
  0x12   : > { %v204_v37 = vld [vmem:[%s1600_s1 + $0xd8] sm:$0x1f] (!%p117_p9)  ;;  %v209_v44 = vld [vmem:[%s1600_s1 + $0x100] sm:$0xff] (!%p117_p9)  ;;  %v210_v46 = vld [vmem:[%s1600_s1 + $0x108] sm:$0xf] (!%p117_p9)  ;;  %s880_s13 = scalar_lea.sflag (!%p117_p9), [#allocation3], %s135_s23 }
  0x13   : > { %220 = vperm.xlu0 (!%p117_p9), %1197, %v191_v5   ;;  %v208_v42 = vld [vmem:[%s1600_s1 + $0xf8] sm:$0xff] (!%p117_p9)  ;;  %s1265_s4 = smov (!%p117_p9), [#allocation2]  }
  0x14   : > { %230 = vperm.xlu1 (!%p117_p9), %1198, %v193_v6   ;;  %v212_v47 = vld [vmem:[%s1600_s1 + $0x118] sm:$0x1f] (!%p117_p9)  ;;  %s1203_s5 = sshll.u32 (!%p117_p9), %s1265_s4, 4  ;;  %s1204_s5 = int_to_ptr.vmem [resolvable:$false] %s1203_s5 }
  0x15   : > { %s1611_s21 = smov (!%p139_p10, %s958_s21), 63  ;;  %v180_v4 = vld [vmem:[%s1600_s1 + $0x18] sm:$0xff]  ;;  %s1205_s6 = scalar_lea.vmem %s1204_s5, 512 }
  0x16   : > { %s959_s26 = sshll.u32 %s1611_s21, 3 }
  0x17   : > { %s1346_s3 = scalar_lea.vmem %s1599_s0, %s959_s26  ;;  %235 = vperm.xlu0 %1197, %v194_v16   ;;  %v189_v16 = vld [vmem:[%s1600_s1 + $0x60] sm:$0xf]  ;;  %s137_s26 = scalar_lea.vmem [#allocation2], %s957_s24 }
  0x18   : > { %v161_v7 = vld [vmem:[%s1346_s3 + $0x80] sm:$0xff]  ;;  %v162_v8 = vld [vmem:[%s1346_s3 + $0x88] sm:$0xff]  ;;  %v163_v12 = vld [vmem:[%s1346_s3 + $0x90] sm:$0xff]  ;;  %240 = vperm.xlu1 %1198, %v195_v17   ;;  %v1264_v17 = vmov 0.0   ;;  %s894_s27 = sshll.u32 %s137_s26, 4  ;;  %s1559_s27 = int_to_ptr.vmem [resolvable:$true] %s894_s27 }
  0x19   : > { %v145_v9 = vld [vmem:[%s1346_s3] sm:$0xff]  ;;  %v1080_v10 = vpack.c.bf16 %v162_v8, %v161_v7  ;;  %v146_v11 = vld [vmem:[%s1346_s3 + $0x8] sm:$0xff]  ;;  %v164_v13 = vld [vmem:[%s1346_s3 + $0x98] sm:$0xff]  ;;  %663 = vmatprep.mubr.f32.mxu1 %v1264_v17  ;;  %p1206_p0 = scmp.lt.s32.totalorder %s1559_s27, %s1204_s5 }
  0x1a   : > { %v1083_v14 = vpack.c.bf16 %v146_v11, %v145_v9  ;;  %v1086_v15 = vpack.c.bf16 %v164_v13, %v163_v12  ;;  %v147_v18 = vld [vmem:[%s1346_s3 + $0x10] sm:$0xff]  ;;  %v148_v19 = vld [vmem:[%s1346_s3 + $0x18] sm:$0xff]  ;;  %v165_v20 = vld [vmem:[%s1346_s3 + $0xa0] sm:$0xff] }
  0x1b   : > { %1082 = vmatprep.subr.msk.bf16.mxu0 %vm1350_vm1, %v1080_v10  ;;  %v166_v21 = vld [vmem:[%s1346_s3 + $0xa8] sm:$0xff]  ;;  %v1089_v23 = vpack.c.bf16 %v148_v19, %v147_v18  ;;  %245 = vperm.xlu0 %1197, %v196_v22   ;;  %v149_v28 = vld [vmem:[%s1346_s3 + $0x20] sm:$0xff]  ;;  %v167_v30 = vld [vmem:[%s1346_s3 + $0xb0] sm:$0xff] }
  0x1c   : > { %1085 = vmatpush3.bf16.xpose.msk.msra.mxu0 %vm1350_vm1, %v1083_v14  ;;  %v1092_v24 = vpack.c.bf16 %v166_v21, %v165_v20  ;;  %250 = vperm.xlu1 %1198, %v197_v25   ;;  %v150_v29 = vld [vmem:[%s1346_s3 + $0x28] sm:$0xff]  ;;  %v168_v31 = vld [vmem:[%s1346_s3 + $0xb8] sm:$0xff]  ;;  %v151_v38 = vld [vmem:[%s1346_s3 + $0x30] sm:$0xff] }
  0x1d   : > { %1088 = vmatprep.subr.msk.bf16.mxu0 %vm1350_vm1, %v1086_v15  ;;  %v1095_v33 = vpack.c.bf16 %v150_v29, %v149_v28  ;;  %v1098_v35 = vpack.c.bf16 %v168_v31, %v167_v30  ;;  %v152_v39 = vld [vmem:[%s1346_s3 + $0x38] sm:$0xff]  ;;  %v169_v40 = vld [vmem:[%s1346_s3 + $0xc0] sm:$0xff]  ;;  %v170_v41 = vld [vmem:[%s1346_s3 + $0xc8] sm:$0xff] }
  0x1e   : > { %v1101_v43 = vpack.c.bf16 %v152_v39, %v151_v38  ;;  %v1104_v45 = vpack.c.bf16 %v170_v41, %v169_v40  ;;  %v153_v48 = vld [vmem:[%s1346_s3 + $0x40] sm:$0xff]  ;;  %v154_v49 = vld [vmem:[%s1346_s3 + $0x48] sm:$0xff]  ;;  %v171_v50 = vld [vmem:[%s1346_s3 + $0xd0] sm:$0xff] }
  0x1f   : > { %255 = vperm.xlu0 %1197, %v198_v26   ;;  %v172_v51 = vld [vmem:[%s1346_s3 + $0xd8] sm:$0xff]  ;;  %v1107_v52 = vpack.c.bf16 %v154_v49, %v153_v48  ;;  %v155_v54 = vld [vmem:[%s1346_s3 + $0x50] sm:$0xff]  ;;  %v173_v56 = vld [vmem:[%s1346_s3 + $0xe0] sm:$0xff] }
  0x20   : > { %260 = vperm.xlu1 %1198, %v199_v27   ;;  %v1110_v53 = vpack.c.bf16 %v172_v51, %v171_v50  ;;  %v156_v55 = vld [vmem:[%s1346_s3 + $0x58] sm:$0xff]  ;;  %v174_v57 = vld [vmem:[%s1346_s3 + $0xe8] sm:$0xff]  ;;  %v157_v60 = vld [vmem:[%s1346_s3 + $0x60] sm:$0xff] }
  0x21   : > { %v1113_v58 = vpack.c.bf16 %v156_v55, %v155_v54  ;;  %v1116_v59 = vpack.c.bf16 %v174_v57, %v173_v56  ;;  %v158_v61 = vld [vmem:[%s1346_s3 + $0x68] sm:$0xff]  ;;  %v175_v62 = vld [vmem:[%s1346_s3 + $0xf0] sm:$0xff]  ;;  %v176_v63 = vld [vmem:[%s1346_s3 + $0xf8] sm:$0xff] }
  0x22   : > { %v1119_v1 = vpack.c.bf16 %v158_v61, %v157_v60  ;;  %v1122_v2 = vpack.c.bf16 %v176_v63, %v175_v62  ;;  %v159_v3 = vld [vmem:[%s1346_s3 + $0x70] sm:$0xff]  ;;  %v160_v5 = vld [vmem:[%s1346_s3 + $0x78] sm:$0xff]  ;;  %v178_v7 = vld [vmem:[%s1600_s1 + $0x8] sm:$0xff]  ;;  %s1199_s3 = scalar_lea.vmem %s1559_s27, 256 }
  0x23   : > { %265 = vperm.xlu0 %1197, %v200_v32   ;;  %v1125_v6 = vpack.c.bf16 %v160_v5, %v159_v3  ;;  %v179_v8 = vld [vmem:[%s1600_s1 + $0x10] sm:$0xff]  ;;  %v182_v9 = vld [vmem:[%s1600_s1 + $0x28] sm:$0xff]  ;;  %v184_v11 = vld [vmem:[%s1600_s1 + $0x38] sm:$0xff]  ;;  %p1200_p11 = scmp.ne.s32.totalorder %s1559_s27, %s1199_s3  ;;  %p1207_p1 = scmp.lt.s32.totalorder %s1205_s6, %s1199_s3 }
  0x24   : > { %1091 = vmatpush3.bf16.xpose.msk.msra.mxu0 %vm1350_vm1, %v1089_v23  ;;  %270 = vperm.xlu1 %1198, %v201_v34   ;;  %v183_v10 = vld [vmem:[%s1600_s1 + $0x30] sm:$0xff]  ;;  %v185_v12 = vld [vmem:[%s1600_s1 + $0x40] sm:$0xff]  ;;  %v186_v13 = vld [vmem:[%s1600_s1 + $0x48] sm:$0xff] }
  0x25   : > { %1094 = vmatprep.subr.msk.bf16.mxu0 %vm1350_vm1, %v1092_v24  ;;  %v187_v14 = vld [vmem:[%s1600_s1 + $0x50] sm:$0xff]  ;;  %v188_v15 = vld [vmem:[%s1600_s1 + $0x58] sm:$0xff]  ;;  %p1201_p12 = pnand %p1200_p11, %p1319_p5  ;;  %p1208_p2 = por %p1207_p1, %p1206_p0 }
  0x27   : > { %275 = vperm.xlu0 %1197, %v202_v36   ;;  %p1202_p13 = pneg %p1201_p12 }
  0x28   : > { %585 = vperm.xlu1 %1198, %v204_v37  }
  0x29   : > { %p1209_p3 = pnand %p1208_p2, %p1202_p13 }
  0x2b   : > { %672 = vperm.xlu0 %1197, %v208_v42  }
  0x2c   : > { %1097 = vmatpush3.bf16.xpose.msk.msra.mxu0 %vm1350_vm1, %v1095_v33  ;;  %677 = vperm.xlu1 %1198, %v209_v44  }
  0x2d   : > { %1100 = vmatprep.subr.msk.bf16.mxu0 %vm1350_vm1, %v1098_v35 }
  0x2f   : > { %682 = vperm.xlu0 %1197, %v210_v46  }
  0x30   : > { %793 = vperm.xlu1 %1198, %v212_v47  }
  0x34   : > { %1103 = vmatpush3.bf16.xpose.msk.msra.mxu0 %vm1350_vm1, %v1101_v43 }
  0x35   : > { %1106 = vmatprep.subr.msk.bf16.mxu0 %vm1350_vm1, %v1104_v45 }
  0x3c   : > { %1109 = vmatpush3.bf16.xpose.msk.msra.mxu0 %vm1350_vm1, %v1107_v52 }
  0x3d   : > { %1112 = vmatprep.subr.msk.bf16.mxu0 %vm1350_vm1, %v1110_v53 }
  0x44   : > { %1115 = vmatpush3.bf16.xpose.msk.msra.mxu0 %vm1350_vm1, %v1113_v58 }
  0x45   : > { %1118 = vmatprep.subr.msk.bf16.mxu0 %vm1350_vm1, %v1116_v59 }
  0x4c   : > { %1121 = vmatpush3.bf16.xpose.msk.msra.mxu0 %vm1350_vm1, %v1119_v1 }
  0x4d   : > { %1124 = vmatprep.subr.msk.bf16.mxu0 %vm1350_vm1, %v1122_v2 }
  0x54   : > { %1127 = vmatpush3.bf16.xpose.msk.msra.mxu0 %vm1350_vm1, %v1125_v6 }
  0x5b   : > { %1055 = vmatmul.mubr.msk.f32.vlgmr.msra.gmra.mrb[0].mxu0 %vm278_vm0, %v1333_v0  ;;  %v181_v0 = vld [vmem:[%s1600_s1 + $0x20] sm:$0xff] }
  0x5c   : > { %1056 = vmatprep.mubr.msk.f32.mxu0 %vm278_vm0, %v178_v7 }
  0x5f   : > { %1057 = vmatmul.mubr.msk.f32.gmra.mrb[2].mxu0 %vm278_vm0, %v178_v7 }
  0x60   : > { %1058 = vmatprep.mubr.msk.f32.mxu0 %vm278_vm0, %v179_v8 }
  0x63   : > { %1059 = vmatmul.mubr.msk.f32.gmra.mrb[4].mxu0 %vm278_vm0, %v179_v8 }
  0x64   : > { %1060 = vmatprep.mubr.msk.f32.mxu0 %vm278_vm0, %v180_v4 }
  0x67   : > { %1061 = vmatmul.mubr.msk.f32.gmra.mrb[6].mxu0 %vm278_vm0, %v180_v4 }
  0x68   : > { %1062 = vmatprep.mubr.msk.f32.mxu0 %vm278_vm0, %v181_v0 }
  0x6b   : > { %1063 = vmatmul.mubr.msk.f32.gmra.mrb[8].mxu0 %vm278_vm0, %v181_v0 }
  0x6c   : > { %1064 = vmatprep.mubr.msk.f32.mxu0 %vm278_vm0, %v182_v9 }
  0x6f   : > { %1065 = vmatmul.mubr.msk.f32.gmra.mrb[10].mxu0 %vm278_vm0, %v182_v9 }
  0x70   : > { %1066 = vmatprep.mubr.msk.f32.mxu0 %vm278_vm0, %v183_v10 }
  0x73   : > { %1067 = vmatmul.mubr.msk.f32.gmra.mrb[12].mxu0 %vm278_vm0, %v183_v10 }
  0x74   : > { %1068 = vmatprep.mubr.msk.f32.mxu0 %vm278_vm0, %v184_v11 }
  0x77   : > { %1069 = vmatmul.mubr.msk.f32.gmra.mrb[14].mxu0 %vm278_vm0, %v184_v11 }
  0x78   : > { %1070 = vmatprep.mubr.msk.f32.mxu0 %vm278_vm0, %v185_v12 }
  0x7b   : > { %1071 = vmatmul.mubr.msk.f32.gmra.mrb[16].mxu0 %vm278_vm0, %v185_v12 }
  0x7c   : > { %1072 = vmatprep.mubr.msk.f32.mxu0 %vm278_vm0, %v186_v13 }
  0x7f   : > { %1073 = vmatmul.mubr.msk.f32.gmra.mrb[18].mxu0 %vm278_vm0, %v186_v13 }
  0x80   : > { %1074 = vmatprep.mubr.msk.f32.mxu0 %vm278_vm0, %v187_v14 }
  0x83   : > { %1075 = vmatmul.mubr.msk.f32.gmra.mrb[20].mxu0 %vm278_vm0, %v187_v14 }
  0x84   : > { %1076 = vmatprep.mubr.msk.f32.mxu0 %vm278_vm0, %v188_v15 }
  0x87   : > { %1077 = vmatmul.mubr.msk.f32.gmra.mrb[22].mxu0 %vm278_vm0, %v188_v15 }
  0x88   : > { %1078 = vmatprep.mubr.msk.f32.mxu0 %vm278_vm0, %v189_v16 }
  0x8b   : > { %1079 = vmatmul.mubr.msk.f32.gmra.mrb[24].mxu0 %vm278_vm0, %v189_v16 }
  0x8e   : > { %v216_v18 = vpop.permute.xlu0 %215 }
  0x8f   : > { %v226_v27 = vpop.permute.xlu1 %225 }
  0x92   : > { %v221_v22 = vpop.permute.xlu0 %220 }
  0x93   : > { %v231_v38 = vpop.permute.xlu1 %230 }
  0x96   : > { %v236_v51 = vpop.permute.xlu0 %235 }
  0x97   : > { %v241_v54 = vpop.permute.xlu1 %240 }
  0x9a   : > { %v246_v5 = vpop.permute.xlu0 %245 }
  0x9b   : > { %v251_v8 = vpop.permute.xlu1 %250 }
 0x12e   : > { %v480_v19 = vpop.f32.mrb[0].mxu0 }
 0x12f   : > { %v482_v20 = vpop.f32.mrb[1].mxu0  ;;  %v481_v21 = vadd.f32 %v480_v19, %v216_v18 }
 0x130   : > { %v483_v23 = vadd.f32 %v482_v20, %v216_v18  ;;  %v256_v20 = vpop.permute.xlu0 %255 }
 0x131   : > { %v557_v29 = vmax.f32 %v481_v21, 0.0 }
 0x132   : > { %v486_v24 = vpop.f32.mrb[2].mxu0  ;;  %v558_v31 = vmax.f32 %v483_v23, 0.0  ;;  %v261_v23 = vpop.permute.xlu1 %260 }
 0x133   : > { %v487_v25 = vadd.f32 %v486_v24, %v221_v22  ;;  %v488_v26 = vpop.f32.mrb[3].mxu0 }
 0x134   : > { %v489_v28 = vadd.f32 %v488_v26, %v221_v22 }
 0x135   : > { %v559_v30 = vmax.f32 %v487_v25, 0.0 }
 0x136   : > { %v560_v32 = vmax.f32 %v489_v28, 0.0  ;;  %v492_v33 = vpop.f32.mrb[4].mxu0 }
 0x137   : > { %v494_v34 = vpop.f32.mrb[5].mxu0  ;;  %v1130_v35 = vpack.c.bf16 %v559_v30, %v557_v29  ;;  %v493_v37 = vadd.f32 %v492_v33, %v226_v27 }
 0x138   : > { %v1128_v36 = vpack.c.bf16 %v560_v32, %v558_v31  ;;  %v495_v39 = vadd.f32 %v494_v34, %v226_v27 }
 0x139   : > { %v561_v44 = vmax.f32 %v493_v37, 0.0 }
 0x13a   : > { %v498_v40 = vpop.f32.mrb[6].mxu0  ;;  %1129 = vmatprep.subr.bf16.mxu1 %v1128_v36  ;;  %v562_v46 = vmax.f32 %v495_v39, 0.0  ;;  %v266_v36 = vpop.permute.xlu0 %265 }
 0x13b   : > { %v499_v41 = vadd.f32 %v498_v40, %v231_v38  ;;  %v500_v42 = vpop.f32.mrb[7].mxu0  ;;  %1131 = vmatpush1.bf16.msra.mxu1 %v1130_v35  ;;  %v271_v39 = vpop.permute.xlu1 %270 }
 0x13c   : > { %v501_v43 = vadd.f32 %v500_v42, %v231_v38 }
 0x13d   : > { %v563_v45 = vmax.f32 %v499_v41, 0.0 }
 0x13e   : > { %v564_v47 = vmax.f32 %v501_v43, 0.0  ;;  %v504_v48 = vpop.f32.mrb[8].mxu0 }
 0x13f   : > { %v1134_v49 = vpack.c.bf16 %v563_v45, %v561_v44  ;;  %v506_v50 = vpop.f32.mrb[9].mxu0  ;;  %v505_v53 = vadd.f32 %v504_v48, %v236_v51 }
 0x140   : > { %v1132_v52 = vpack.c.bf16 %v564_v47, %v562_v46  ;;  %v507_v55 = vadd.f32 %v506_v50, %v236_v51  ;;  %v276_v50 = vpop.permute.xlu0 %275 }
 0x141   : > { %v565_v60 = vmax.f32 %v505_v53, 0.0 }
 0x142   : > { %v510_v56 = vpop.f32.mrb[10].mxu0  ;;  %1133 = vmatprep.subr.bf16.mxu1 %v1132_v52  ;;  %v566_v62 = vmax.f32 %v507_v55, 0.0 }
 0x143   : > { %v511_v57 = vadd.f32 %v510_v56, %v241_v54  ;;  %v512_v58 = vpop.f32.mrb[11].mxu0  ;;  %1135 = vmatpush1.bf16.msra.mxu1 %v1134_v49 }
 0x144   : > { %v513_v59 = vadd.f32 %v512_v58, %v241_v54  ;;  %v203_v58 = vld [vmem:[%s1600_s1 + $0xd0] sm:$0x1f] }
 0x145   : > { %v567_v61 = vmax.f32 %v511_v57, 0.0 }
 0x146   : > { %v568_v63 = vmax.f32 %v513_v59, 0.0  ;;  %v516_v1 = vpop.f32.mrb[12].mxu0 }
 0x147   : > { %v1138_v2 = vpack.c.bf16 %v567_v61, %v565_v60  ;;  %v518_v3 = vpop.f32.mrb[13].mxu0  ;;  %v517_v7 = vadd.f32 %v516_v1, %v246_v5  ;;  %v586_v60 = vpop.permute.xlu1 %585  ;;  %v205_v1 = vld [vmem:[%s1600_s1 + $0xe0] sm:$0xff] }
 0x148   : > { %v1136_v6 = vpack.c.bf16 %v568_v63, %v566_v62  ;;  %v519_v4 = vadd.f32 %v518_v3, %v246_v5  ;;  %v207_v3 = vld [vmem:[%s1600_s1 + $0xf0] sm:$0xf] }
 0x149   : > { %v569_v12 = vmax.f32 %v517_v7, 0.0  ;;  %v673_v7 = vpop.permute.xlu0 %672 }
 0x14a   : > { %v522_v0 = vpop.f32.mrb[14].mxu0  ;;  %1137 = vmatprep.subr.bf16.mxu1 %v1136_v6  ;;  %v570_v14 = vmax.f32 %v519_v4, 0.0 }
 0x14b   : > { %v523_v9 = vadd.f32 %v522_v0, %v251_v8  ;;  %v524_v10 = vpop.f32.mrb[15].mxu0  ;;  %1139 = vmatpush1.bf16.msra.mxu1 %v1138_v2  ;;  %v206_v2 = vld [vmem:[%s1600_s1 + $0xe8] sm:$0xff]  ;;  %v678_v4 = vpop.permute.xlu1 %677 }
 0x14c   : > { %v525_v11 = vadd.f32 %v524_v10, %v251_v8 }
 0x14d   : > { %v571_v13 = vmax.f32 %v523_v9, 0.0 }
 0x14e   : > { %v572_v15 = vmax.f32 %v525_v11, 0.0  ;;  %v528_v16 = vpop.f32.mrb[16].mxu0 }
 0x14f   : > { %v1142_v18 = vpack.c.bf16 %v571_v13, %v569_v12  ;;  %v530_v19 = vpop.f32.mrb[17].mxu0  ;;  %v529_v22 = vadd.f32 %v528_v16, %v256_v20 }
 0x150   : > { %v1140_v21 = vpack.c.bf16 %v572_v15, %v570_v14  ;;  %v531_v24 = vadd.f32 %v530_v19, %v256_v20  ;;  %v683_v19 = vpop.permute.xlu0 %682 }
 0x151   : > { %v573_v29 = vmax.f32 %v529_v22, 0.0 }
 0x152   : > { %v534_v25 = vpop.f32.mrb[18].mxu0  ;;  %1141 = vmatprep.subr.bf16.mxu1 %v1140_v21  ;;  %v574_v31 = vmax.f32 %v531_v24, 0.0 }
 0x153   : > { %v535_v26 = vadd.f32 %v534_v25, %v261_v23  ;;  %v536_v27 = vpop.f32.mrb[19].mxu0  ;;  %1143 = vmatpush1.bf16.msra.mxu1 %v1142_v18 }
 0x154   : > { %v537_v28 = vadd.f32 %v536_v27, %v261_v23  ;;  %v794_v27 = vpop.permute.xlu1 %793 }
 0x155   : > { %v575_v30 = vmax.f32 %v535_v26, 0.0  ;;  %v211_v26 = vld [vmem:[%s1600_s1 + $0x110] sm:$0x1f] }
 0x156   : > { %v576_v32 = vmax.f32 %v537_v28, 0.0  ;;  %v540_v33 = vpop.f32.mrb[20].mxu0 }
 0x157   : > { %v1146_v34 = vpack.c.bf16 %v575_v30, %v573_v29  ;;  %v542_v35 = vpop.f32.mrb[21].mxu0  ;;  %v541_v38 = vadd.f32 %v540_v33, %v266_v36 }
 0x158   : > { %v1144_v37 = vpack.c.bf16 %v576_v32, %v574_v31  ;;  %v543_v40 = vadd.f32 %v542_v35, %v266_v36 }
 0x159   : > { %v577_v45 = vmax.f32 %v541_v38, 0.0 }
 0x15a   : > { %v546_v41 = vpop.f32.mrb[22].mxu0  ;;  %1145 = vmatprep.subr.bf16.mxu1 %v1144_v37  ;;  %v578_v47 = vmax.f32 %v543_v40, 0.0 }
 0x15b   : > { %v547_v42 = vadd.f32 %v546_v41, %v271_v39  ;;  %v548_v43 = vpop.f32.mrb[23].mxu0  ;;  %1147 = vmatpush1.bf16.msra.mxu1 %v1146_v34 }
 0x15c   : > { %v549_v44 = vadd.f32 %v548_v43, %v271_v39 }
 0x15d   : > { %v579_v46 = vmax.f32 %v547_v42, 0.0 }
 0x15e   : > { %v580_v48 = vmax.f32 %v549_v44, 0.0  ;;  %v552_v49 = vpop.f32.mrb[24].mxu0 }
 0x15f   : > { %v1150_v51 = vpack.c.bf16 %v579_v46, %v577_v45  ;;  %v554_v52 = vpop.f32.mrb[25].mxu0  ;;  %v553_v55 = vadd.f32 %v552_v49, %v276_v50 }
 0x160   : > { %v1148_v53 = vpack.c.bf16 %v580_v48, %v578_v47  ;;  %v555_v54 = vadd.f32 %v554_v52, %v276_v50 }
 0x161   : > { %v581_v57 = vmax.f32 %v553_v55, 0.0 }
 0x162   : > { %v582_v56 = vmax.f32 %v555_v54, 0.0  ;;  %1149 = vmatprep.subr.bf16.mxu1 %v1148_v53 }
 0x163   : > { %1151 = vmatpush1.bf16.msra.mxu1 %v1150_v51 }
 0x164   : > { %1005 = vmatprep.subr.msk.mxu1 %vm592_vm2, %v582_v56 }
 0x167   : > { %1006 = vmatpush1.msk.msra.mxu1 %vm592_vm2, %v581_v57 }
 0x168   : > { %1007 = vmatmul.mubr.msk.f32.vlgmr.msra.gmra.mrb[0].mxu1 %vm588_vm3, %v203_v58 }
 0x169   : > { %766 = vmatprep.mubr.f32.mxu1 %v1264_v17 }
 0x23b   : > { %v665_v59 = vpop.f32.mrb[0].mxu1 }
 0x23c   : > { %v667_v61 = vpop.f32.mrb[1].mxu1  ;;  %v666_v63 = vadd.f32 %v665_v59, %v586_v60 }
 0x23d   : > { %v668_v62 = vadd.f32 %v667_v61, %v586_v60 }
 0x23f   : > { %1008 = vmatprep.subr.msk.mxu1 %vm695_vm4, %v668_v62 }
 0x240   : > { %1009 = vmatpush1.msk.msra.mxu1 %vm695_vm4, %v666_v63 }
 0x241   : > { %1010 = vmatmul.mubr.msk.f32.vlgmr.msra.gmra.mrb[2].mxu1 %vm685_vm5, %v205_v1 }
 0x242   : > { %772 = vmatprep.mubr.f32.mxu1 %v1264_v17 }
 0x245   : > { %1011 = vmatmul.mubr.msk.f32.gmra.mrb[4].mxu1 %vm685_vm5, %v206_v2 }
 0x246   : > { %778 = vmatprep.mubr.f32.mxu1 %v1264_v17 }
 0x249   : > { %1012 = vmatmul.mubr.msk.f32.gmra.mrb[6].mxu1 %vm685_vm5, %v207_v3 }
 0x24a   : > { %870 = vmatprep.mubr.f32.mxu1 %v1264_v17 }
 0x314   : > { %v768_v5 = vpop.f32.mrb[2].mxu1 }
 0x315   : > { %v770_v6 = vpop.f32.mrb[3].mxu1  ;;  %v769_v8 = vadd.f32 %v768_v5, %v673_v7 }
 0x316   : > { %v771_v0 = vadd.f32 %v770_v6, %v673_v7 }
 0x317   : > { %v785_v13 = vmax.f32 %v769_v8, 0.0 }
 0x318   : > { %v774_v9 = vpop.f32.mrb[4].mxu1  ;;  %v786_v15 = vmax.f32 %v771_v0, 0.0 }
 0x319   : > { %v775_v10 = vadd.f32 %v774_v9, %v678_v4  ;;  %v776_v11 = vpop.f32.mrb[5].mxu1 }
 0x31a   : > { %v777_v12 = vadd.f32 %v776_v11, %v678_v4 }
 0x31b   : > { %v787_v14 = vmax.f32 %v775_v10, 0.0 }
 0x31c   : > { %v788_v16 = vmax.f32 %v777_v12, 0.0  ;;  %v780_v18 = vpop.f32.mrb[6].mxu1 }
 0x31d   : > { %v1154_v20 = vpack.c.bf16 %v787_v14, %v785_v13  ;;  %v782_v17 = vpop.f32.mrb[7].mxu1  ;;  %v781_v23 = vadd.f32 %v780_v18, %v683_v19 }
 0x31e   : > { %v1152_v21 = vpack.c.bf16 %v788_v16, %v786_v15  ;;  %v783_v22 = vadd.f32 %v782_v17, %v683_v19 }
 0x31f   : > { %v789_v25 = vmax.f32 %v781_v23, 0.0 }
 0x320   : > { %v790_v24 = vmax.f32 %v783_v22, 0.0  ;;  %1153 = vmatprep.subr.bf16.mxu1 %v1152_v21 }
 0x321   : > { %1155 = vmatpush1.bf16.msra.mxu1 %v1154_v20 }
 0x322   : > { %1013 = vmatprep.subr.msk.mxu1 %vm592_vm2, %v790_v24 }
 0x325   : > { %1014 = vmatpush1.msk.msra.mxu1 %vm592_vm2, %v789_v25 }
 0x326   : > { %1015 = vmatmul.mubr.msk.f32.vlgmr.msra.gmra.mrb[8].mxu1 %vm796_vm6, %v211_v26 }
 0x3f9   : > { %v872_v28 = vpop.f32.mrb[8].mxu1 }
 0x3fa   : > { %v873_v29 = vadd.f32 %v872_v28, %v794_v27  ;;  %v874_v30 = vpop.f32.mrb[9].mxu1 }
 0x3fb   : > { %v875_v31 = vadd.f32 %v874_v30, %v794_v27 }
 0x3fc   : > { %877 = vst [vmem:[%s137_s26] sm:$0x1f] %v873_v29 }
 0x3fd   : > { %878 = vst [vmem:[%s137_s26 + $0x8] sm:$0x1f] %v875_v31 }
 0x3fe   : > { %1212 = shalt.err (!%p1209_p3)
}
 0x3ff   : > { %s1213_s7 = scalar_lea.hbm %s1557_s30, 256  ;;  %s1217_s16 = scalar_lea.hbm %s1601_s2, 512 }
 0x400   : > { %p1214_p4 = scmp.ne.s32.totalorder %s1557_s30, %s1213_s7  ;;  %p1218_p9 = scmp.lt.u32.totalorder %s1557_s30, %s1601_s2 }
 0x401   : > { %p1219_p10 = scmp.lt.u32.totalorder %s1217_s16, %s1213_s7  ;;  %p1221_p12 = scmp.lt.u32.totalorder %s1213_s7, %s1557_s30 }
 0x402   : > { %p1215_p7 = pnand %p1214_p4, %p1319_p5 }
 0x403   : > { %p1220_p11 = por %p1219_p10, %p1218_p9 }
 0x404   : > { %p1216_p8 = pneg %p1215_p7 }
 0x405   : > { %p1222_p13 = por %p1221_p12, %p1220_p11 }
 0x407   : > { %p1223_p0 = pnand %p1222_p13, %p1216_p8 }
 0x409   : > { %1226 = shalt.err (!%p1223_p0)
}
 0x40a   : > { %1156 = dma.vmem_to_hbm [thread:$0]  (%p1319_p5), %s1559_s27, 256, %s1557_s30, %s880_s13  }
 0x40b PF: > { %p1162_p1 = scmp.ge.s32.totalorder %s1261_s12, 2  ;;  %s906_s22 = sand.u32 1, %s1249_s9  }
 0x40c   : > { %s907_s23 = scalar_lea.sflag [#allocation3], %s906_s22 }
 0x40d   : > { %p1159_p2 = pnand %p1162_p1, %p1323_p6 }
 0x40f   : > { %1244 = dma.done.wait (!%p1159_p2), %s907_s23, 256  }
 0x410   : > { %1246 = vsyncadd (!%p1159_p2), %s907_s23, 4294967040  ;;  %p12_p3 = scmp.ge.s32.totalorder %s1306_s15, 4   ;;  %s1606_s9 = smov %s1253_s10 }
 0x411   : > { %s1607_s10 = smov %s1257_s11  ;;  %s1608_s11 = smov %s1317_s18 }
 0x412   : > { %s1609_s12 = smov %s1306_s15  ;;  %14 = sbr.rel (!%p12_p3) target bundleno = 3 (0x3), region = 63 }
 0x419   :  { %912 = vsyncpa [#allocation3], 1 }
 0x41a   :  { %914 = vsyncpa [#allocation3 + $0x1], 1 }

</bundles_post_ra>
